<compile_context>
chip_gen: v5e
topology: v5e:2x2
jax: 0.10.0
libtpu: 0.0.40
codegen_flags: <defaults>
</compile_context>

<pallas_src>
import jax
import jax.numpy as jnp
from jax.experimental import pallas as pl
from jax.experimental.pallas import tpu as pltpu


def integrand_kernel(xT_ref, hT_ref, w1x_ref, w1h_ref, b1_ref,
                     w2_ref, b2_ref, w3_ref, b3_ref, o_ref):
    # Layer 1: W1 @ cat(x, h)  ==  W1x @ x  +  W1h @ h        -> [H1, TILE_M]
    a = (jnp.dot(w1x_ref[...], xT_ref[...], preferred_element_type=jnp.float32)
         + jnp.dot(w1h_ref[...], hT_ref[...], preferred_element_type=jnp.float32)
         + b1_ref[...])
    a = jnp.maximum(a, 0.0)
    # Layer 2: ReLU(W2 @ a + b2)                              -> [H2, TILE_M]
    a = jnp.dot(w2_ref[...], a, preferred_element_type=jnp.float32) + b2_ref[...]
    a = jnp.maximum(a, 0.0)
    # Layer 3 + fused ELU(alpha=1) + 1                        -> [out_d, TILE_M]
    y = jnp.dot(w3_ref[...], a, preferred_element_type=jnp.float32) + b3_ref[...]
    o_ref[...] = jnp.where(y > 0.0, y + 1.0, jnp.exp(y)).astype(o_ref.dtype)


def integrand_nn_forward(x, h, params, *, tile_m=1024, stream_dtype=None):
    """Fused IntegrandNN forward.  x: [B, x_d], h: [B, h_d] (float32).

    params = (W1, b1, W2, b2, W3, b3) in PyTorch nn.Linear layout
    (W: [fan_out, fan_in], b: [fan_out]).  Returns [B, out_d] float32.
    """
    B, x_d = x.shape
    h_d = h.shape[1]
    w1, b1, w2, b2, w3, b3 = params
    H1, in_d = w1.shape
    H2 = w2.shape[0]
    out_d = w3.shape[0]
    assert in_d == x_d + h_d

    # ---- batch tiling: lane-dense tiles (multiple of 128), padded batch ----
    LANE = 128
    b_lane = max(LANE, ((B + LANE - 1) // LANE) * LANE)
    tile_m = max(LANE, (min(tile_m, b_lane) // LANE) * LANE)
    b_pad = ((b_lane + tile_m - 1) // tile_m) * tile_m
    grid = (b_pad // tile_m,)

    # ---- feature-major ("transposed") operands (layout plumbing only) ----
    in_dt = jnp.float32 if stream_dtype is None else stream_dtype
    xT = jnp.pad(x.T, ((0, 0), (0, b_pad - B))).astype(in_dt)      # [x_d, b_pad]
    hT = jnp.pad(h.T, ((0, 0), (0, b_pad - B))).astype(in_dt)      # [h_d, b_pad]
    w1x = w1[:, :x_d]                                              # [H1, x_d]
    w1h = w1[:, x_d:]                                              # [H1, h_d]
    b1c = b1.reshape(H1, 1)
    b2c = b2.reshape(H2, 1)
    b3c = b3.reshape(out_d, 1)

    def pinned(a):  # tiny weights/biases: fetched once, stay resident in VMEM
        return pl.BlockSpec(a.shape, lambda j: (0, 0))

    flops = 2 * b_pad * (in_d * H1 + H1 * H2 + H2 * out_d)
    param_bytes = sum(int(p.size) * 4 for p in params)
    bytes_accessed = int(b_pad * (x_d + h_d) * jnp.dtype(in_dt).itemsize
                         + b_pad * out_d * 4 + param_bytes)

    out_T = pl.pallas_call(
        integrand_kernel,
        out_shape=jax.ShapeDtypeStruct((out_d, b_pad), jnp.float32),
        grid=grid,
        in_specs=[
            pl.BlockSpec((x_d, tile_m), lambda j: (0, j)),   # streams
            pl.BlockSpec((h_d, tile_m), lambda j: (0, j)),   # streams
            pinned(w1x), pinned(w1h), pinned(b1c),
            pinned(w2), pinned(b2c),
            pinned(w3), pinned(b3c),
        ],
        out_specs=pl.BlockSpec((out_d, tile_m), lambda j: (0, j)),
        compiler_params=pltpu.CompilerParams(
            dimension_semantics=("parallel",)),  # v7x: shard batch across 2 TCs
        cost_estimate=pl.CostEstimate(
            flops=flops,
            transcendentals=b_pad * out_d,
            bytes_accessed=bytes_accessed),
    )(xT, hT, w1x, w1h, b1c, w2, b2c, w3, b3c)

    return out_T[:, :B].T


def init_params(key, in_d, hidden_layers, out_d):
    """PyTorch nn.Linear-style init: W [fan_out, fan_in], b [fan_out]."""
    hs = [in_d] + list(hidden_layers) + [out_d]
    params = []
    for h0, h1 in zip(hs, hs[1:]):
        key, kw, kb = jax.random.split(key, 3)
        bound = 1.0 / jnp.sqrt(jnp.float32(h0))
        w = jax.random.uniform(kw, (h1, h0), jnp.float32, -bound, bound)
        b = jax.random.uniform(kb, (h1,), jnp.float32, -bound, bound)
        params.extend([w, b])
    return tuple(params)


def reference_forward(x, h, params):
    z = jnp.concatenate([x, h], axis=1)
    w1, b1, w2, b2, w3, b3 = params
    a = jnp.maximum(z @ w1.T + b1, 0.0)
    a = jnp.maximum(a @ w2.T + b2, 0.0)
    y = a @ w3.T + b3
    y = jnp.where(y > 0.0, y, jnp.exp(y) - 1.0)
    return y + 1.0


if __name__ == "__main__":
    key = jax.random.PRNGKey(0)

    # IntegrandNN(in_d=4, hidden_layers=[32, 32], out_d=1); forward cats x
    # (1 col) with h (3 cols) so the concatenated feature dim equals in_d.
    in_d, hidden_layers, out_d = 4, [32, 32], 1
    batch = 300                      # not a multiple of 128 -> exercises padding
    x_d, h_d = 1, in_d - 1

    kx, kh, kp = jax.random.split(key, 3)
    x = jax.random.normal(kx, (batch, x_d), jnp.float32)
    h = jax.random.normal(kh, (batch, h_d), jnp.float32)
    params = init_params(kp, in_d, hidden_layers, out_d)

    # f32 path (tile_m=128 -> 3 grid steps at this batch size).
    out = jax.block_until_ready(integrand_nn_forward(x, h, params, tile_m=128))
    ref = reference_forward(x, h, params)
    assert out.shape == (batch, out_d)
    assert jnp.allclose(out, ref, atol=1e-5, rtol=1e-5)

    # bf16-streamed path (HBM-bandwidth mode for v6e/v7x); accumulation stays f32.
    out_bf16 = jax.block_until_ready(
        integrand_nn_forward(x, h, params, tile_m=128, stream_dtype=jnp.bfloat16))
    assert jnp.allclose(out_bf16, ref, atol=5e-2, rtol=5e-2)

    print("KERNEL_OK")
</pallas_src>

<mosaic_0001>
module attributes {stable_mosaic.version = 11 : i64} {
  func.func @integrand_kernel(%arg0: i32, %arg1: memref<1x128xf32, #tpu.memory_space<vmem>>, %arg2: memref<3x128xf32, #tpu.memory_space<vmem>>, %arg3: memref<32x1xf32, #tpu.memory_space<vmem>>, %arg4: memref<32x3xf32, #tpu.memory_space<vmem>>, %arg5: memref<32x1xf32, #tpu.memory_space<vmem>>, %arg6: memref<32x32xf32, #tpu.memory_space<vmem>>, %arg7: memref<32x1xf32, #tpu.memory_space<vmem>>, %arg8: memref<1x32xf32, #tpu.memory_space<vmem>>, %arg9: memref<1x1xf32, #tpu.memory_space<vmem>>, %arg10: memref<1x128xf32, #tpu.memory_space<vmem>>) attributes {dimension_semantics = [#tpu.dimension_semantics<parallel>], iteration_bounds = array<i64: 3>, scalar_prefetch = 0 : i64, scratch_operands = 0 : i64, tpu.core_type = #tpu.core_type<tc>, window_params = [{transform_indices = @transform_0, window_bounds = array<i64: 1, 128>}, {transform_indices = @transform_1, window_bounds = array<i64: 3, 128>}, {pipeline_mode = #tpu.pipeline_mode<synchronous>, transform_indices = @transform_2, window_bounds = array<i64: 32, 1>}, {pipeline_mode = #tpu.pipeline_mode<synchronous>, transform_indices = @transform_3, window_bounds = array<i64: 32, 3>}, {pipeline_mode = #tpu.pipeline_mode<synchronous>, transform_indices = @transform_4, window_bounds = array<i64: 32, 1>}, {pipeline_mode = #tpu.pipeline_mode<synchronous>, transform_indices = @transform_5, window_bounds = array<i64: 32, 32>}, {pipeline_mode = #tpu.pipeline_mode<synchronous>, transform_indices = @transform_6, window_bounds = array<i64: 32, 1>}, {pipeline_mode = #tpu.pipeline_mode<synchronous>, transform_indices = @transform_7, window_bounds = array<i64: 1, 32>}, {pipeline_mode = #tpu.pipeline_mode<synchronous>, transform_indices = @transform_8, window_bounds = array<i64: 1, 1>}, {transform_indices = @transform_9, window_bounds = array<i64: 1, 128>}]} {
    %c0 = arith.constant 0 : index
    %c0_0 = arith.constant 0 : index
    %0 = vector.load %arg3[%c0, %c0_0] : memref<32x1xf32, #tpu.memory_space<vmem>>, vector<32x1xf32>
    %c0_1 = arith.constant 0 : index
    %c0_2 = arith.constant 0 : index
    %1 = vector.load %arg1[%c0_1, %c0_2] : memref<1x128xf32, #tpu.memory_space<vmem>>, vector<1x128xf32>
    %cst = arith.constant dense<0.000000e+00> : vector<32x128xf32>
    %2 = tpu.matmul %0, %1, %cst {dimension_numbers = #tpu.dot_dimension_numbers<[1], [0], [0], [1], [0, 0, 1, 1], [], []>} : vector<32x1xf32>, vector<1x128xf32>, vector<32x128xf32> -> vector<32x128xf32>
    %c0_3 = arith.constant 0 : index
    %c0_4 = arith.constant 0 : index
    %3 = vector.load %arg4[%c0_3, %c0_4] : memref<32x3xf32, #tpu.memory_space<vmem>>, vector<32x3xf32>
    %c0_5 = arith.constant 0 : index
    %c0_6 = arith.constant 0 : index
    %4 = vector.load %arg2[%c0_5, %c0_6] : memref<3x128xf32, #tpu.memory_space<vmem>>, vector<3x128xf32>
    %cst_7 = arith.constant dense<0.000000e+00> : vector<32x128xf32>
    %5 = tpu.matmul %3, %4, %cst_7 {dimension_numbers = #tpu.dot_dimension_numbers<[1], [0], [0], [1], [0, 0, 1, 1], [], []>} : vector<32x3xf32>, vector<3x128xf32>, vector<32x128xf32> -> vector<32x128xf32>
    %6 = arith.addf %2, %5 : vector<32x128xf32>
    %c0_8 = arith.constant 0 : index
    %c0_9 = arith.constant 0 : index
    %7 = vector.load %arg5[%c0_8, %c0_9] : memref<32x1xf32, #tpu.memory_space<vmem>>, vector<32x1xf32>
    %8 = vector.broadcast %7 : vector<32x1xf32> to vector<32x128xf32>
    %9 = arith.addf %6, %8 : vector<32x128xf32>
    %cst_10 = arith.constant 0.000000e+00 : f32
    %10 = vector.broadcast %cst_10 : f32 to vector<32x128xf32>
    %11 = arith.maximumf %9, %10 : vector<32x128xf32>
    %c0_11 = arith.constant 0 : index
    %c0_12 = arith.constant 0 : index
    %12 = vector.load %arg6[%c0_11, %c0_12] : memref<32x32xf32, #tpu.memory_space<vmem>>, vector<32x32xf32>
    %cst_13 = arith.constant dense<0.000000e+00> : vector<32x128xf32>
    %13 = tpu.matmul %12, %11, %cst_13 {dimension_numbers = #tpu.dot_dimension_numbers<[1], [0], [0], [1], [0, 0, 1, 1], [], []>} : vector<32x32xf32>, vector<32x128xf32>, vector<32x128xf32> -> vector<32x128xf32>
    %c0_14 = arith.constant 0 : index
    %c0_15 = arith.constant 0 : index
    %14 = vector.load %arg7[%c0_14, %c0_15] : memref<32x1xf32, #tpu.memory_space<vmem>>, vector<32x1xf32>
    %15 = vector.broadcast %14 : vector<32x1xf32> to vector<32x128xf32>
    %16 = arith.addf %13, %15 : vector<32x128xf32>
    %cst_16 = arith.constant 0.000000e+00 : f32
    %17 = vector.broadcast %cst_16 : f32 to vector<32x128xf32>
    %18 = arith.maximumf %16, %17 : vector<32x128xf32>
    %c0_17 = arith.constant 0 : index
    %c0_18 = arith.constant 0 : index
    %19 = vector.load %arg8[%c0_17, %c0_18] : memref<1x32xf32, #tpu.memory_space<vmem>>, vector<1x32xf32>
    %cst_19 = arith.constant dense<0.000000e+00> : vector<1x128xf32>
    %20 = tpu.matmul %19, %18, %cst_19 {dimension_numbers = #tpu.dot_dimension_numbers<[1], [0], [0], [1], [0, 0, 1, 1], [], []>} : vector<1x32xf32>, vector<32x128xf32>, vector<1x128xf32> -> vector<1x128xf32>
    %c0_20 = arith.constant 0 : index
    %c0_21 = arith.constant 0 : index
    %21 = vector.load %arg9[%c0_20, %c0_21] : memref<1x1xf32, #tpu.memory_space<vmem>>, vector<1x1xf32>
    %22 = vector.broadcast %21 : vector<1x1xf32> to vector<1x128xf32>
    %23 = arith.addf %20, %22 : vector<1x128xf32>
    %cst_22 = arith.constant 0.000000e+00 : f32
    %24 = vector.broadcast %cst_22 : f32 to vector<1x128xf32>
    %25 = arith.cmpf ogt, %23, %24 : vector<1x128xf32>
    %cst_23 = arith.constant 1.000000e+00 : f32
    %26 = vector.broadcast %cst_23 : f32 to vector<1x128xf32>
    %27 = arith.addf %23, %26 : vector<1x128xf32>
    %28 = math.exp %23 : vector<1x128xf32>
    %29 = arith.select %25, %27, %28 : vector<1x128xi1>, vector<1x128xf32>
    %c0_24 = arith.constant 0 : index
    %c0_25 = arith.constant 0 : index
    %30 = vector.load %arg10[%c0_24, %c0_25] : memref<1x128xf32, #tpu.memory_space<vmem>>, vector<1x128xf32>
    tpu.vector_store %arg10[%c0_24, %c0_25], %29 {strides = array<i32>} : memref<1x128xf32, #tpu.memory_space<vmem>>, vector<1x128xf32>,
    return
  }
  func.func @transform_0(%arg0: i32) -> (i32, i32) {
    %c0_i32 = arith.constant 0 : i32
    %c0_i32_0 = arith.constant 0 : i32
    return %c0_i32, %arg0 : i32, i32
  }
  func.func @transform_1(%arg0: i32) -> (i32, i32) {
    %c0_i32 = arith.constant 0 : i32
    %c0_i32_0 = arith.constant 0 : i32
    return %c0_i32, %arg0 : i32, i32
  }
  func.func @transform_2(%arg0: i32) -> (i32, i32) {
    %c0_i32 = arith.constant 0 : i32
    %c0_i32_0 = arith.constant 0 : i32
    %c0_i32_1 = arith.constant 0 : i32
    return %c0_i32, %c0_i32_0 : i32, i32
  }
  func.func @transform_3(%arg0: i32) -> (i32, i32) {
    %c0_i32 = arith.constant 0 : i32
    %c0_i32_0 = arith.constant 0 : i32
    %c0_i32_1 = arith.constant 0 : i32
    return %c0_i32, %c0_i32_0 : i32, i32
  }
  func.func @transform_4(%arg0: i32) -> (i32, i32) {
    %c0_i32 = arith.constant 0 : i32
    %c0_i32_0 = arith.constant 0 : i32
    %c0_i32_1 = arith.constant 0 : i32
    return %c0_i32, %c0_i32_0 : i32, i32
  }
  func.func @transform_5(%arg0: i32) -> (i32, i32) {
    %c0_i32 = arith.constant 0 : i32
    %c0_i32_0 = arith.constant 0 : i32
    %c0_i32_1 = arith.constant 0 : i32
    return %c0_i32, %c0_i32_0 : i32, i32
  }
  func.func @transform_6(%arg0: i32) -> (i32, i32) {
    %c0_i32 = arith.constant 0 : i32
    %c0_i32_0 = arith.constant 0 : i32
    %c0_i32_1 = arith.constant 0 : i32
    return %c0_i32, %c0_i32_0 : i32, i32
  }
  func.func @transform_7(%arg0: i32) -> (i32, i32) {
    %c0_i32 = arith.constant 0 : i32
    %c0_i32_0 = arith.constant 0 : i32
    %c0_i32_1 = arith.constant 0 : i32
    return %c0_i32, %c0_i32_0 : i32, i32
  }
  func.func @transform_8(%arg0: i32) -> (i32, i32) {
    %c0_i32 = arith.constant 0 : i32
    %c0_i32_0 = arith.constant 0 : i32
    %c0_i32_1 = arith.constant 0 : i32
    return %c0_i32, %c0_i32_0 : i32, i32
  }
  func.func @transform_9(%arg0: i32) -> (i32, i32) {
    %c0_i32 = arith.constant 0 : i32
    %c0_i32_0 = arith.constant 0 : i32
    return %c0_i32, %arg0 : i32, i32
  }
}

</mosaic_0001>

<bundles_post_ra>
// kernel: tpu_custom_call.1
= control target key start
LH: loop header
LB: loop body
LE: loop exit
PB: predicated region body
PF: predicated region fallthrough
CT: control target
= control target key end

     0   :  { %s1018_s0 = inlined_call_operand.vmem [shape: f32[1,384], index: 0, kind: input, shape index: {}]   ;;  %s1019_s1 = inlined_call_operand.vmem [shape: f32[3,384], index: 1, kind: input, shape index: {}]   ;;  %s1020_s2 = inlined_call_operand.vmem [shape: f32[32,1], index: 2, kind: input, shape index: {}]   ;;  %s1021_s3 = inlined_call_operand.vmem [shape: f32[32,3], index: 3, kind: input, shape index: {}]   ;;  %s1022_s4 = inlined_call_operand.vmem [shape: f32[32,1], index: 4, kind: input, shape index: {}]   ;;  %s1023_s5 = inlined_call_operand.vmem [shape: f32[32,32], index: 5, kind: input, shape index: {}]   ;;  %s1024_s6 = inlined_call_operand.vmem [shape: f32[32,1], index: 6, kind: input, shape index: {}]   ;;  %s1025_s7 = inlined_call_operand.vmem [shape: f32[1,32], index: 7, kind: input, shape index: {}]   ;;  %s1026_s8 = inlined_call_operand.<no memory space> [shape: f32[1,1], index: 8, kind: input, shape index: {}]   ;;  %s1027_s9 = inlined_call_operand.hbm [shape: f32[1,384], index: 9, kind: output, shape index: {}]  }
   0x1   :  { %v14_v0 = vstv %s1026_s8 }
   0x2   :  { %15 = vst [vmem:[#allocation2] sm:$0x1] %v14_v0 }
   0x3   :  { %16 = vsyncpa [#allocation4], 0 }
   0x4   :  { %18 = vsyncpa [#allocation4 + $0x1], 0  ;;  %s854_s11 = smov 0   ;;  %s856_s12 = smov 0  }
   0x5   :  { %s858_s13 = smov 0   ;;  %s860_s14 = smov 0  }
   0x6 LB: > { %s875_s8 = sadd.s32 4294967295, %s798_s14   ;;  %s665_s15 = sadd.s32 4294967294, %s798_s14   ;;  %s798_s14 = sphi %s860_s14, %s1033_s14   ;;  %s794_s13 = sphi %s858_s13, %s1032_s13   ;;  %s790_s12 = sphi %s856_s12, %s1031_s12   ;;  %s786_s11 = sphi %s854_s11, %s1030_s11  }
   0x7   : > { %s879_s16 = sadd.s32 1, %s798_s14   ;;  %s230_s17 = sadd.s32 1, %s794_s13 }
   0x8   : > { %s227_s18 = ssub.s32 %s798_s14, %s879_s16  ;;  %p240_p0 = scmp.ne.s32.totalorder %s794_s13, %s790_s12 }
   0x9   : > { %p228_p1 = scmp.eq.s32.totalorder %s227_s18, 0  ;;  %p241_p2 = scmp.eq.s32.totalorder %s875_s8, 2 }
   0xa   : > { %p246_p3 = scmp.ne.s32.totalorder %s790_s12, %s786_s11  ;;  %p247_p4 = scmp.eq.s32.totalorder %s665_s15, 2 }
   0xb   : > { %s890_s19 = scalar_select %p228_p1, %s794_s13, %s230_s17  }
   0xc   : > { %p892_p5 = por %p241_p2, %p240_p0  ;;  %p896_p6 = por %p247_p4, %p246_p3 }
   0xd   : > { %p668_p7 = scmp.ge.s32.totalorder %s798_s14, 1  ;;  %p299_p8 = scmp.lt.s32.totalorder %s798_s14, 4 }
   0xf   : > { %p300_p9 = pnand %p668_p7, %p299_p8 }
  0x10   : > { %p336_p10 = scmp.lt.s32.totalorder (!%p300_p9), %s875_s8, 2  ;;  %s334_s17 = sand.u32 (!%p300_p9), 1, %s790_s12  }
  0x11   : > { %303 = sbr.rel (%p300_p9) target bundleno = 495 (0x1ef), region = 56  ;;  %s597_s23 = scalar_lea.hbm (!%p300_p9), %s1027_s9, %s875_s8 }
  0x12   : > { %s335_s25 = scalar_lea.vmem (!%p300_p9), [#allocation3], %s334_s17  ;;  %s601_s26 = sshll.u32 (!%p300_p9), %s597_s23, 4  ;;  %s602_s26 = int_to_ptr.hbm [resolvable:$true] %s601_s26 }
  0x13   : > { %s589_s28 = scalar_lea.sflag (!%p300_p9), [#allocation4], %s334_s17  ;;  %s750_s29 = sshra.s32 (!%p300_p9), %s602_s26, 4  ;;  %s751_s29 = int_to_ptr.hbm [resolvable:$true] %s750_s29 }
  0x14   : > { %s756_s10 = scalar_lea.hbm (!%p300_p9), %s1027_s9, 3  ;;  %p757_p0 = scmp.lt.s32.totalorder (!%p300_p9), %s751_s29, %s1027_s9 }
  0x16   : > { %v446_v1 = vld [vmem:[%s1022_s4 + $0x8] sm:$0xff]  ;;  %s337_s24 = scalar_select %p336_p10, %s875_s8, 2  ;;  %v800_v2 = vmov 0   ;;  %v448_v3 = vld [vmem:[%s1022_s4 + $0x18] sm:$0xff]  ;;  %vm412_vm0 = vcmask 1040384   ;;  %vm366_vm1 = vcmask 1042432  }
  0x17   : > { %732 = vset.pattern.permute.xlu1 %v800_v2  ;;  %731 = vset.pattern.permute.xlu0 %v800_v2  ;;  %v343_v4 = vld [vmem:[%s1020_s2] sm:$0xff]  ;;  %vm399_vm2 = vcmask 7168   ;;  %vm353_vm3 = vcmask 23552   ;;  %v447_v9 = vld [vmem:[%s1022_s4 + $0x10] sm:$0xff]  ;;  %v344_v10 = vld [vmem:[%s1020_s2 + $0x8] sm:$0xff]  ;;  %vm505_vm4 = vcmask 261120  }
  0x18   : > { %456 = vperm.xlu1 %732, %v446_v1   ;;  %466 = vperm.xlu0 %731, %v448_v3   ;;  %s669_s27 = sshll.u32 %s337_s24, 2  ;;  %s338_s30 = scalar_lea.vmem %s1018_s0, %s337_s24  ;;  %v348_v6 = vld [vmem:[%s1021_s3] sm:$0xff]  ;;  %v349_v11 = vld [vmem:[%s1021_s3 + $0x8] sm:$0xff]  ;;  %v345_v14 = vld [vmem:[%s1020_s2 + $0x10] sm:$0xff] }
  0x19   : > { %733 = vset.pattern.permute.xlu2 %v800_v2  ;;  %s342_s22 = scalar_lea.vmem %s1019_s1, %s669_s27  ;;  %v347_v5 = vld [vmem:[%s338_s30] sm:$0x1]  ;;  %v482_v12 = vld [vmem:[%s1024_s6 + $0x8] sm:$0xff]  ;;  %v350_v15 = vld [vmem:[%s1021_s3 + $0x10] sm:$0xff]  ;;  %s599_s24 = sshll.u32 %s335_s25, 4  ;;  %s600_s24 = int_to_ptr.vmem [resolvable:$true] %s599_s24 }
  0x1a   : > { %v352_v7 = vld [vmem:[%s342_s22] sm:$0x7]  ;;  %675 = vmatpush.msk.msra.mxu1 %vm412_vm0, %v347_v5  ;;  %v346_v16 = vld [vmem:[%s1020_s2 + $0x18] sm:$0xff]  ;;  %v483_v39 = vld [vmem:[%s1024_s6 + $0x10] sm:$0xff]  ;;  %s752_s27 = scalar_lea.hbm %s751_s29, 1 }
  0x1b   : > { %670 = vmatpush.msk.msra.mxu0 %vm366_vm1, %v352_v7  ;;  %676 = vmatmul.msk.f32.vlgmr.msra.gmra.mxu1 %vm399_vm2, %v343_v4  ;;  %v445_v8 = vld [vmem:[%s1022_s4] sm:$0xff]  ;;  %v351_v17 = vld [vmem:[%s1021_s3 + $0x18] sm:$0xff]  ;;  %v478_v47 = vld [vmem:[%s1023_s5 + $0x8] sm:$0xff]  ;;  %p753_p11 = scmp.ne.s32.totalorder %s751_s29, %s752_s27  ;;  %p758_p1 = scmp.lt.s32.totalorder %s756_s10, %s752_s27 }
  0x1c   : > { %671 = vmatmul.msk.f32.vlgmr.msra.gmra.mxu0 %vm353_vm3, %v348_v6  ;;  %v481_v13 = vld [vmem:[%s1024_s6] sm:$0xff]  ;;  %v484_v26 = vld [vmem:[%s1024_s6 + $0x18] sm:$0xff]  ;;  %v479_v48 = vld [vmem:[%s1023_s5 + $0x10] sm:$0xff] }
  0x1d   : > { %502 = vperm.xlu2 %733, %v484_v26   ;;  %v477_v44 = vld [vmem:[%s1023_s5] sm:$0xff]  ;;  %v480_v45 = vld [vmem:[%s1023_s5 + $0x18] sm:$0xff]  ;;  %p754_p12 = pnand %p753_p11, %p892_p5  ;;  %p759_p2 = por %p758_p1, %p757_p0 }
  0x1e   : > { %v552_v46 = vld [vmem:[#allocation2] sm:$0x1] }
  0x1f   : > { %v551_v1 = vld [vmem:[%s1025_s7] sm:$0x1]  ;;  %p755_p13 = pneg %p754_p12 }
  0x20   : > { %451 = vperm.xlu1 %732, %v445_v8   ;;  %461 = vperm.xlu0 %731, %v447_v9  }
  0x21   : > { %p760_p3 = pnand %p759_p2, %p755_p13 }
  0x23   : > { %677 = vmatmul.msk.f32.gmra.mxu1 %vm399_vm2, %v344_v10 }
  0x24   : > { %672 = vmatmul.msk.f32.gmra.mxu0 %vm353_vm3, %v349_v11 }
  0x25   : > { %497 = vperm.xlu2 %733, %v483_v39  }
  0x28   : > { %492 = vperm.xlu0 %731, %v482_v12   ;;  %487 = vperm.xlu1 %732, %v481_v13  }
  0x2b   : > { %678 = vmatmul.msk.f32.gmra.mxu1 %vm399_vm2, %v345_v14 }
  0x2c   : > { %673 = vmatmul.msk.f32.gmra.mxu0 %vm353_vm3, %v350_v15 }
  0x2d   : > { %555 = vperm.xlu2 %733, %v552_v46  }
  0x33   : > { %679 = vmatmul.msk.f32.gmra.mxu1 %vm399_vm2, %v346_v16 }
  0x34   : > { %674 = vmatmul.msk.f32.gmra.mxu0 %vm353_vm3, %v351_v17 }
  0x77   : > { %v503_v49 = vpop.permute.xlu2 %502 }
  0x7f   : > { %v498_v56 = vpop.permute.xlu2 %497 }
  0x87   : > { %v556_v2 = vpop.permute.xlu2 %555 }
  0x88   : > { %v558_v3 = vperm.slane %v556_v2, 0 }
  0x8a   : > { %v467_v23 = vpop.permute.xlu0 %466  ;;  %v457_v25 = vpop.permute.xlu1 %456 }
  0x92   : > { %v462_v32 = vpop.permute.xlu0 %461  ;;  %v452_v36 = vpop.permute.xlu1 %451 }
  0x98   : > { %v433_v18 = vpop.f32.mrf.mxu1 }
  0x99   : > { %v387_v19 = vpop.f32.mrf.mxu0 }
  0x9a   : > { %v434_v33 = vadd.f32 %v433_v18, %v387_v19  ;;  %v493_v55 = vpop.permute.xlu0 %492  ;;  %v488_v60 = vpop.permute.xlu1 %487 }
  0x9c   : > { %v469_v40 = vadd.f32 %v452_v36, %v434_v33 }
  0x9e   : > { %v473_v43 = vmax.f32 %v469_v40, 0.0 }
  0xa0   : > { %v436_v20 = vpop.f32.mrf.mxu1 }
  0xa1   : > { %v390_v21 = vpop.f32.mrf.mxu0 }
  0xa2   : > { %v437_v30 = vadd.f32 %v436_v20, %v390_v21 }
  0xa4   : > { %v470_v38 = vadd.f32 %v457_v25, %v437_v30 }
  0xa6   : > { %v474_v42 = vmax.f32 %v470_v38, 0.0 }
  0xa8   : > { %v439_v22 = vpop.f32.mrf.mxu1 }
  0xa9   : > { %v393_v24 = vpop.f32.mrf.mxu0 }
  0xaa   : > { %v440_v27 = vadd.f32 %v439_v22, %v393_v24 }
  0xac   : > { %v471_v35 = vadd.f32 %v462_v32, %v440_v27 }
  0xae   : > { %v475_v41 = vmax.f32 %v471_v35, 0.0 }
  0xb0   : > { %v442_v28 = vpop.f32.mrf.mxu1 }
  0xb1   : > { %v396_v29 = vpop.f32.mrf.mxu0 }
  0xb2   : > { %v443_v31 = vadd.f32 %v442_v28, %v396_v29 }
  0xb4   : > { %v472_v34 = vadd.f32 %v467_v23, %v443_v31 }
  0xb6   : > { %v476_v37 = vmax.f32 %v472_v34, 0.0 }
  0xb8   : > { %530 = vmatpush.msra.mxu2 %v476_v37  ;;  %687 = vmatpush.msra.mxu3 %v476_v37 }
  0xba   : > { %531 = vmatpush.msra.mxu2 %v475_v41  ;;  %688 = vmatpush.msra.mxu3 %v475_v41 }
  0xbc   : > { %532 = vmatpush.msra.mxu2 %v474_v42  ;;  %689 = vmatpush.msra.mxu3 %v474_v42 }
  0xbe   : > { %533 = vmatpush.msra.mxu2 %v473_v43  ;;  %690 = vmatpush.msra.mxu3 %v473_v43 }
  0xbf   : > { %680 = vmatmul.msk.f32.vlgmr.msra.gmra.mxu2 %vm505_vm4, %v477_v44  ;;  %683 = vmatmul.msk.f32.vlgmr.msra.gmra.mxu3 %vm505_vm4, %v480_v45 }
  0xc7   : > { %681 = vmatmul.msk.f32.gmra.mxu2 %vm505_vm4, %v478_v47 }
  0xcf   : > { %682 = vmatmul.msk.f32.gmra.mxu2 %vm505_vm4, %v479_v48 }
 0x142   : > { %v535_v50 = vpop.f32.mrf.mxu2  ;;  %v544_v51 = vpop.f32.mrf.mxu3 }
 0x143   : > { %v545_v52 = vadd.f32 %v544_v51, %v503_v49  ;;  %v536_v61 = vadd.f32 %v535_v50, %v488_v60 }
 0x145   : > { %v550_v53 = vmax.f32 %v545_v52, 0.0  ;;  %v547_v0 = vmax.f32 %v536_v61, 0.0 }
 0x147   : > { %574 = vmatpush.msrb.mxu3 %v550_v53 }
 0x14a   : > { %v538_v54 = vpop.f32.mrf.mxu2 }
 0x14b   : > { %v539_v58 = vadd.f32 %v538_v54, %v493_v55 }
 0x14d   : > { %v548_v63 = vmax.f32 %v539_v58, 0.0 }
 0x152   : > { %v541_v57 = vpop.f32.mrf.mxu2 }
 0x153   : > { %v542_v59 = vadd.f32 %v541_v57, %v498_v56 }
 0x155   : > { %v549_v62 = vmax.f32 %v542_v59, 0.0 }
 0x157   : > { %575 = vmatpush.msrb.mxu3 %v549_v62 }
 0x159   : > { %576 = vmatpush.msrb.mxu3 %v548_v63 }
 0x15b   : > { %577 = vmatpush.msrb.mxu3 %v547_v0 }
 0x15c   : > { %684 = vmatmul.msk.f32.vlgmr.msrb.gmra.mxu3 %vm505_vm4, %v551_v1 }
 0x1df   : > { %v579_v4 = vpop.f32.mrf.mxu3 }
 0x1e0   : > { %v580_v5 = vadd.f32 %v579_v4, %v558_v3 }
 0x1e2   : > { %v584_v6 = vmul.f32 1.442695, %v580_v5  ;;  %v583_v7 = vadd.f32 1.0, %v580_v5  ;;  %vm582_vm5 = vcmp.gt.f32.partialorder %v580_v5, 0.0 }
 0x1e4   : > { %734 = vpow2.f32 %v584_v6 }
 0x1ea   : > { %v735_v8 = vpop.eup %734 }
 0x1eb   : > { %v586_v9 = vsel %vm582_vm5, %v583_v7, %v735_v8 }
 0x1ec   : > { %587 = vst [vmem:[%s335_s25] sm:$0x1] %v586_v9 }
 0x1ed   : > { %763 = shalt.err (!%p760_p3)
}
 0x1ee   : > { %691 = dma.vmem_to_hbm [thread:$0]  (%p892_p5), %s600_s24, 16, %s602_s26, %s589_s28  }
 0x1ef PF: > { %p697_p4 = scmp.ge.s32.totalorder %s798_s14, 2  ;;  %s613_s17 = sand.u32 1, %s786_s11  }
 0x1f0   : > { %s614_s22 = scalar_lea.sflag [#allocation4], %s613_s17 }
 0x1f1   : > { %p694_p7 = pnand %p697_p4, %p896_p6 }
 0x1f3   : > { %p695_p8 = pneg %p694_p7 }
 0x1f5   : > { %781 = dma.done.wait (%p695_p8), %s614_s22, 16  }
 0x1f6   : > { %783 = vsyncadd (%p695_p8), %s614_s22, 4294967280  ;;  %p21_p9 = scmp.ge.s32.totalorder %s879_s16, 5   ;;  %s1030_s11 = smov %s790_s12 }
 0x1f7   : > { %s1031_s12 = smov %s794_s13  ;;  %s1032_s13 = smov %s890_s19 }
 0x1f8   : > { %s1033_s14 = smov %s879_s16  ;;  %23 = sbr.rel (!%p21_p9) target bundleno = 6 (0x6), region = 94 }
 0x1fd   :  { %619 = vsyncpa [#allocation4], 1 }
 0x1fe   :  { %621 = vsyncpa [#allocation4 + $0x1], 1 }

</bundles_post_ra>
